<compile_context>
chip_gen: v6e
topology: v6e:2x2x1
jax: 0.10.0
libtpu: 0.0.40
codegen_flags: <defaults>
</compile_context>

<pallas_src>
import jax
import jax.numpy as jnp
from jax.experimental import pallas as pl
from jax.experimental.pallas import tpu as pltpu

LANE = 128


def _round_up(n, m):
    return (n + m - 1) // m * m


def mlp_kernel(x_ref, w1_ref, b1_ref, w2_ref, b2_ref, w3_ref, b3_ref, o_ref):
    # x_ref : (TILE_B, K)  f32 (cast to bf16 in-kernel for the MXU)
    # w1_ref: (K, H1P)     bf16    b1_ref: (1, H1P) f32
    # w2_ref: (H1P, H2P)   bf16    b2_ref: (1, H2P) f32
    # w3_ref: (1, H2P)     f32     b3_ref: (1, 1)   f32  (SMEM scalar)
    # o_ref : (1, TILE_B)  f32     (batch on the lane axis -> lane-dense store)
    x = x_ref[...].astype(w1_ref.dtype)
    h1 = jnp.tanh(
        jnp.dot(x, w1_ref[...], preferred_element_type=jnp.float32)
        + b1_ref[...]
    )
    h2 = jnp.tanh(
        jnp.dot(h1.astype(w2_ref.dtype), w2_ref[...],
                preferred_element_type=jnp.float32)
        + b2_ref[...]
    )
    # Output layer has a single unit: VPU multiply + XLU lane reduce instead of
    # an MXU matmul with N=1; stored transposed so the store is lane-dense.
    out_vec = jnp.sum(h2 * w3_ref[...], axis=-1) + b3_ref[0, 0]
    o_ref[...] = out_vec.reshape(1, -1).astype(o_ref.dtype)


def prepare_params(params, compute_dtype=jnp.bfloat16):
    """One-time prep: pad hidden dims to 128 lanes, cast matmul weights to bf16."""
    w1, b1 = params["w1"], params["b1"]
    w2, b2 = params["w2"], params["b2"]
    w3, b3 = params["w3"], params["b3"]
    K, H1 = w1.shape
    H2 = w2.shape[1]
    H1P, H2P = _round_up(H1, LANE), _round_up(H2, LANE)

    w1p = jnp.zeros((K, H1P), compute_dtype).at[:, :H1].set(w1.astype(compute_dtype))
    b1p = jnp.zeros((1, H1P), jnp.float32).at[:, :H1].set(b1.astype(jnp.float32))
    w2p = jnp.zeros((H1P, H2P), compute_dtype).at[:H1, :H2].set(w2.astype(compute_dtype))
    b2p = jnp.zeros((1, H2P), jnp.float32).at[:, :H2].set(b2.astype(jnp.float32))
    # Output-layer weights kept f32 as a lane-major row (consumed by VPU reduce).
    w3p = jnp.zeros((1, H2P), jnp.float32).at[:, :H2].set(
        w3.reshape(1, H2).astype(jnp.float32))
    b3p = b3.reshape(1, 1).astype(jnp.float32)
    return {"w1": w1p, "b1": b1p, "w2": w2p, "b2": b2p, "w3": w3p, "b3": b3p}


def mlp_forward(x, prepared, *, tile_b=512):
    """x: (B, input_size) float32 -> (B, 1) float32."""
    B, K = x.shape
    H1P = prepared["w1"].shape[1]
    H2P = prepared["w2"].shape[1]
    assert K == prepared["w1"].shape[0]

    n_tiles = pl.cdiv(B, tile_b)

    bytes_accessed = (
        B * K * 4                                                    # x (f32)
        + (K * H1P + H1P * H2P) * jnp.dtype(prepared["w1"].dtype).itemsize
        + (H1P + H2P + H2P + 1) * 4                                  # biases + w3 row
        + B * 4                                                      # output
    )
    cost = pl.CostEstimate(
        flops=2 * B * (K * H1P + H1P * H2P + H2P),
        transcendentals=B * (H1P + H2P),
        bytes_accessed=bytes_accessed,
    )

    out = pl.pallas_call(
        mlp_kernel,
        out_shape=jax.ShapeDtypeStruct((1, B), jnp.float32),
        grid=(n_tiles,),
        in_specs=[
            pl.BlockSpec((tile_b, K), lambda i: (i, 0)),        # x tile
            pl.BlockSpec((K, H1P), lambda i: (0, 0)),           # w1 (resident)
            pl.BlockSpec((1, H1P), lambda i: (0, 0)),           # b1 (resident)
            pl.BlockSpec((H1P, H2P), lambda i: (0, 0)),         # w2 (resident)
            pl.BlockSpec((1, H2P), lambda i: (0, 0)),           # b2 (resident)
            pl.BlockSpec((1, H2P), lambda i: (0, 0)),           # w3 row (resident)
            pl.BlockSpec(memory_space=pltpu.MemorySpace.SMEM),  # b3 scalar
        ],
        out_specs=pl.BlockSpec((1, tile_b), lambda i: (0, i)),
        compiler_params=pltpu.CompilerParams(
            dimension_semantics=("parallel",),
        ),
        cost_estimate=cost,
    )(
        x,
        prepared["w1"], prepared["b1"],
        prepared["w2"], prepared["b2"],
        prepared["w3"], prepared["b3"],
    )
    # (1, B) row-major -> (B, 1): same element order, plain reshape.
    return out.reshape(B, 1)


def init_params(key, input_size, hidden_1, hidden_2):
    """Deterministic init mimicking nn.Linear's uniform(-1/sqrt(fan_in), +1/sqrt(fan_in))."""
    ks = jax.random.split(key, 6)

    def lin(kw, kb, fan_in, fan_out):
        bound = 1.0 / jnp.sqrt(fan_in)
        w = jax.random.uniform(kw, (fan_in, fan_out), jnp.float32, -bound, bound)
        b = jax.random.uniform(kb, (1, fan_out), jnp.float32, -bound, bound)
        return w, b

    w1, b1 = lin(ks[0], ks[1], input_size, hidden_1)
    w2, b2 = lin(ks[2], ks[3], hidden_1, hidden_2)
    w3, b3 = lin(ks[4], ks[5], hidden_2, 1)
    return {"w1": w1, "b1": b1, "w2": w2, "b2": b2, "w3": w3, "b3": b3}


if __name__ == "__main__":
    key = jax.random.PRNGKey(0)
    k_x, k_p = jax.random.split(key)

    # Small shapes consistent with the module's forward pass.
    batch, input_size, hidden_1, hidden_2 = 200, 32, 64, 32

    x = jax.random.normal(k_x, (batch, input_size), jnp.float32)
    params = init_params(k_p, input_size, hidden_1, hidden_2)
    prepared = prepare_params(params)

    # tile_b=128 keeps the demo tiny while exercising the batch grid (2 tiles)
    # and the partial-last-block path (200 % 128 != 0).
    out = mlp_forward(x, prepared, tile_b=128)
    out = jax.block_until_ready(out)

    # Pure-JAX f32 reference.
    h1 = jnp.tanh(x @ params["w1"] + params["b1"])
    h2 = jnp.tanh(h1 @ params["w2"] + params["b2"])
    ref = h2 @ params["w3"] + params["b3"]

    assert out.shape == (batch, 1)
    # bf16 matmul operands -> loosened tolerance vs the f32 reference.
    assert jnp.allclose(out, ref, atol=3e-2, rtol=3e-2), float(
        jnp.max(jnp.abs(out - ref)))

    print("KERNEL_OK")
</pallas_src>

<mosaic_0001>
module attributes {stable_mosaic.version = 11 : i64} {
  func.func @mlp_kernel(%arg0: i32, %arg1: memref<128x32xf32, #tpu.memory_space<vmem>>, %arg2: memref<32x128xbf16, #tpu.memory_space<vmem>>, %arg3: memref<1x128xf32, #tpu.memory_space<vmem>>, %arg4: memref<128x128xbf16, #tpu.memory_space<vmem>>, %arg5: memref<1x128xf32, #tpu.memory_space<vmem>>, %arg6: memref<1x128xf32, #tpu.memory_space<vmem>>, %arg7: memref<1x1xf32, #tpu.memory_space<smem>>, %arg8: memref<1x128xf32, #tpu.memory_space<vmem>>) attributes {dimension_semantics = [#tpu.dimension_semantics<parallel>], iteration_bounds = array<i64: 2>, scalar_prefetch = 0 : i64, scratch_operands = 0 : i64, tpu.core_type = #tpu.core_type<tc>, window_params = [{transform_indices = @transform_0, window_bounds = array<i64: 128, 32>}, {pipeline_mode = #tpu.pipeline_mode<synchronous>, transform_indices = @transform_1, window_bounds = array<i64: 32, 128>}, {pipeline_mode = #tpu.pipeline_mode<synchronous>, transform_indices = @transform_2, window_bounds = array<i64: 1, 128>}, {pipeline_mode = #tpu.pipeline_mode<synchronous>, transform_indices = @transform_3, window_bounds = array<i64: 128, 128>}, {pipeline_mode = #tpu.pipeline_mode<synchronous>, transform_indices = @transform_4, window_bounds = array<i64: 1, 128>}, {pipeline_mode = #tpu.pipeline_mode<synchronous>, transform_indices = @transform_5, window_bounds = array<i64: 1, 128>}, {transform_indices = @transform_6, window_bounds = array<i64: 1, 1>}, {transform_indices = @transform_7, window_bounds = array<i64: 1, 128>}]} {
    %c0 = arith.constant 0 : index
    %c0_0 = arith.constant 0 : index
    %0 = vector.load %arg1[%c0, %c0_0] : memref<128x32xf32, #tpu.memory_space<vmem>>, vector<128x32xf32>
    %1 = arith.truncf %0 : vector<128x32xf32> to vector<128x32xbf16>
    %c0_1 = arith.constant 0 : index
    %c0_2 = arith.constant 0 : index
    %2 = vector.load %arg2[%c0_1, %c0_2] : memref<32x128xbf16, #tpu.memory_space<vmem>>, vector<32x128xbf16>
    %cst = arith.constant dense<0.000000e+00> : vector<128x128xf32>
    %3 = tpu.matmul %1, %2, %cst {dimension_numbers = #tpu.dot_dimension_numbers<[1], [0], [0], [1], [0, 0, 1, 1], [], []>} : vector<128x32xbf16>, vector<32x128xbf16>, vector<128x128xf32> -> vector<128x128xf32>
    %c0_3 = arith.constant 0 : index
    %c0_4 = arith.constant 0 : index
    %4 = vector.load %arg3[%c0_3, %c0_4] : memref<1x128xf32, #tpu.memory_space<vmem>>, vector<1x128xf32>
    %5 = vector.broadcast %4 : vector<1x128xf32> to vector<128x128xf32>
    %6 = arith.addf %3, %5 : vector<128x128xf32>
    %7 = math.tanh %6 : vector<128x128xf32>
    %8 = arith.truncf %7 : vector<128x128xf32> to vector<128x128xbf16>
    %c0_5 = arith.constant 0 : index
    %c0_6 = arith.constant 0 : index
    %9 = vector.load %arg4[%c0_5, %c0_6] : memref<128x128xbf16, #tpu.memory_space<vmem>>, vector<128x128xbf16>
    %cst_7 = arith.constant dense<0.000000e+00> : vector<128x128xf32>
    %10 = tpu.matmul %8, %9, %cst_7 {dimension_numbers = #tpu.dot_dimension_numbers<[1], [0], [0], [1], [0, 0, 1, 1], [], []>} : vector<128x128xbf16>, vector<128x128xbf16>, vector<128x128xf32> -> vector<128x128xf32>
    %c0_8 = arith.constant 0 : index
    %c0_9 = arith.constant 0 : index
    %11 = vector.load %arg5[%c0_8, %c0_9] : memref<1x128xf32, #tpu.memory_space<vmem>>, vector<1x128xf32>
    %12 = vector.broadcast %11 : vector<1x128xf32> to vector<128x128xf32>
    %13 = arith.addf %10, %12 : vector<128x128xf32>
    %14 = math.tanh %13 : vector<128x128xf32>
    %c0_10 = arith.constant 0 : index
    %c0_11 = arith.constant 0 : index
    %15 = vector.load %arg6[%c0_10, %c0_11] : memref<1x128xf32, #tpu.memory_space<vmem>>, vector<1x128xf32>
    %16 = vector.broadcast %15 : vector<1x128xf32> to vector<128x128xf32>
    %17 = arith.mulf %14, %16 : vector<128x128xf32>
    %cst_12 = arith.constant dense<0.000000e+00> : vector<128xf32>
    %18 = vector.multi_reduction <add>, %17, %cst_12 [1] : vector<128x128xf32> to vector<128xf32>
    %c0_13 = arith.constant 0 : index
    %c0_14 = arith.constant 0 : index
    %19 = memref.load %arg7[%c0_13, %c0_14] : memref<1x1xf32, #tpu.memory_space<smem>>
    %20 = vector.broadcast %19 : f32 to vector<128xf32>
    %21 = arith.addf %18, %20 : vector<128xf32>
    %22 = vector.shape_cast %21 : vector<128xf32> to vector<1x128xf32>
    %c0_15 = arith.constant 0 : index
    %c0_16 = arith.constant 0 : index
    %23 = vector.load %arg8[%c0_15, %c0_16] : memref<1x128xf32, #tpu.memory_space<vmem>>, vector<1x128xf32>
    tpu.vector_store %arg8[%c0_15, %c0_16], %22 {strides = array<i32>} : memref<1x128xf32, #tpu.memory_space<vmem>>, vector<1x128xf32>,
    return
  }
  func.func @transform_0(%arg0: i32) -> (i32, i32) {
    %c0_i32 = arith.constant 0 : i32
    %c0_i32_0 = arith.constant 0 : i32
    return %arg0, %c0_i32 : i32, i32
  }
  func.func @transform_1(%arg0: i32) -> (i32, i32) {
    %c0_i32 = arith.constant 0 : i32
    %c0_i32_0 = arith.constant 0 : i32
    %c0_i32_1 = arith.constant 0 : i32
    return %c0_i32, %c0_i32_0 : i32, i32
  }
  func.func @transform_2(%arg0: i32) -> (i32, i32) {
    %c0_i32 = arith.constant 0 : i32
    %c0_i32_0 = arith.constant 0 : i32
    %c0_i32_1 = arith.constant 0 : i32
    return %c0_i32, %c0_i32_0 : i32, i32
  }
  func.func @transform_3(%arg0: i32) -> (i32, i32) {
    %c0_i32 = arith.constant 0 : i32
    %c0_i32_0 = arith.constant 0 : i32
    %c0_i32_1 = arith.constant 0 : i32
    return %c0_i32, %c0_i32_0 : i32, i32
  }
  func.func @transform_4(%arg0: i32) -> (i32, i32) {
    %c0_i32 = arith.constant 0 : i32
    %c0_i32_0 = arith.constant 0 : i32
    %c0_i32_1 = arith.constant 0 : i32
    return %c0_i32, %c0_i32_0 : i32, i32
  }
  func.func @transform_5(%arg0: i32) -> (i32, i32) {
    %c0_i32 = arith.constant 0 : i32
    %c0_i32_0 = arith.constant 0 : i32
    %c0_i32_1 = arith.constant 0 : i32
    return %c0_i32, %c0_i32_0 : i32, i32
  }
  func.func @transform_6(%arg0: i32) -> (i32, i32) {
    %c0_i32 = arith.constant 0 : i32
    %c0_i32_0 = arith.constant 0 : i32
    %c0_i32_1 = arith.constant 0 : i32
    return %c0_i32, %c0_i32_0 : i32, i32
  }
  func.func @transform_7(%arg0: i32) -> (i32, i32) {
    %c0_i32 = arith.constant 0 : i32
    %c0_i32_0 = arith.constant 0 : i32
    return %c0_i32, %arg0 : i32, i32
  }
}

</mosaic_0001>

<bundles_post_ra>
// kernel: tpu_custom_call.1
= control target key start
LH: loop header
LB: loop body
LE: loop exit
PB: predicated region body
PF: predicated region fallthrough
CT: control target
= control target key end

     0   :  { %s1537_s0 = inlined_call_operand.vmem [shape: f32[200,32], index: 0, kind: input, shape index: {}]   ;;  %s1538_s1 = inlined_call_operand.vmem [shape: bf16[32,128], index: 1, kind: input, shape index: {}]   ;;  %s1539_s2 = inlined_call_operand.vmem [shape: f32[1,128], index: 2, kind: input, shape index: {}]   ;;  %s1540_s3 = inlined_call_operand.vmem [shape: bf16[128,128], index: 3, kind: input, shape index: {}]   ;;  %s1541_s4 = inlined_call_operand.vmem [shape: f32[1,128], index: 4, kind: input, shape index: {}]   ;;  %s1542_s5 = inlined_call_operand.vmem [shape: f32[1,128], index: 5, kind: input, shape index: {}]   ;;  %s1543_s6 = inlined_call_operand.<no memory space> [shape: f32[1,1], index: 6, kind: input, shape index: {}]   ;;  %s1544_s7 = inlined_call_operand.hbm [shape: f32[1,200], index: 7, kind: output, shape index: {}]  }
   0x1   :  { %12 = sst [smem:[#allocation2]] %s1543_s6 }
   0x2   :  { %13 = vsyncpa [#allocation4], 0 }
   0x3   :  { %15 = vsyncpa [#allocation4 + $0x1], 0  ;;  %s1290_s26 = smov 0   ;;  %s1292_s27 = smov 0  }
   0x4   :  { %s1294_s28 = smov 0   ;;  %s1296_s29 = smov 0  }
   0x5 LB: > { %s946_s6 = sadd.s32 4294967295, %s1244_s29   ;;  %s947_s30 = sadd.s32 4294967294, %s1244_s29   ;;  %s1244_s29 = sphi %s1296_s29, %s1550_s29   ;;  %s1240_s28 = sphi %s1294_s28, %s1549_s28   ;;  %s1236_s27 = sphi %s1292_s27, %s1548_s27   ;;  %s1232_s26 = sphi %s1290_s26, %s1547_s26  }
   0x6   : > { %s1313_s8 = sadd.s32 1, %s1244_s29   ;;  %s180_s9 = sadd.s32 1, %s1240_s28 }
   0x7   : > { %s177_s10 = ssub.s32 %s1244_s29, %s1313_s8  ;;  %p190_p0 = scmp.ne.s32.totalorder %s1240_s28, %s1236_s27 }
   0x8   : > { %p178_p1 = scmp.eq.s32.totalorder %s177_s10, 0  ;;  %p191_p2 = scmp.eq.s32.totalorder %s946_s6, 1 }
   0x9   : > { %p196_p3 = scmp.ne.s32.totalorder %s1236_s27, %s1232_s26  ;;  %p197_p4 = scmp.eq.s32.totalorder %s947_s30, 1 }
   0xa   : > { %s1323_s11 = scalar_select %p178_p1, %s1240_s28, %s180_s9  }
   0xb   : > { %p1325_p5 = por %p191_p2, %p190_p0  ;;  %p1329_p6 = por %p197_p4, %p196_p3 }
   0xc   : > { %p950_p7 = scmp.ge.s32.totalorder %s1244_s29, 1  ;;  %p250_p8 = scmp.lt.s32.totalorder %s1244_s29, 3 }
   0xe   : > { %p251_p9 = pnand %p950_p7, %p250_p8 }
   0xf   : > { %s1338_s16 = sshll.u32 (!%p251_p9), %s946_s6, 4  ;;  %s732_s15 = sld [smem:[#allocation2]] (!%p251_p9) }
  0x10   : > { %254 = sbr.rel (%p251_p9) target bundleno = 649 (0x289), region = 48  ;;  %p290_p10 = scmp.lt.s32.totalorder (!%p251_p9), %s1338_s16, 24 }
  0x11   : > { %s283_s17 = sand.u32 (!%p251_p9), 1, %s1236_s27   ;;  %s1502_s22 = scalar_lea.hbm (!%p251_p9), %s1544_s7, %s1338_s16 }
  0x12   : > { %s284_s18 = scalar_lea.vmem (!%p251_p9), [#allocation3], %s283_s17  ;;  %s880_s23 = scalar_lea.sflag (!%p251_p9), [#allocation4], %s283_s17 }
  0x13   : > { %s892_s19 = sshll.u32 (!%p251_p9), %s284_s18, 4  ;;  %s1246_s25 = smov (!%p251_p9), [#allocation3]   ;;  %s893_s19 = int_to_ptr.vmem [resolvable:$true] %s892_s19 }
  0x14   : > { %s1188_s6 = sshll.u32 (!%p251_p9), %s1246_s25, 4  ;;  %s1189_s6 = int_to_ptr.vmem [resolvable:$false] %s1188_s6 }
  0x15   : > { %v1110_v0 = vld [vmem:[%s1538_s1 + $0x8] sm:$0xff]   ;;  %v1111_v1 = vld [vmem:[%s1538_s1] sm:$0xff]   ;;  %v1112_v2 = vld [vmem:[%s1540_s3 + $0x38] sm:$0xff]   ;;  %s291_s21 = scalar_select %p290_p10, %s1338_s16, 24  ;;  %vm347_vm0 = vcmask 261120   ;;  %vm777_vm1 = vcmask 130112  }
  0x16   : > { %1003 = vmatprep.subr.bf16.mxu0 %v1110_v0  ;;  %v1113_v3 = vld [vmem:[%s1540_s3 + $0x30] sm:$0xff]   ;;  %1055 = vmatprep.subr.bf16.mxu1 %v1112_v2  ;;  %v1114_v28 = vld [vmem:[%s1540_s3 + $0x28] sm:$0xff]   ;;  %v1115_v29 = vld [vmem:[%s1540_s3 + $0x20] sm:$0xff]   ;;  %vm784_vm2 = vcmask 195712   ;;  %vm791_vm3 = vcmask 261312   ;;  %vm798_vm4 = vcmask 326912   ;;  %p1191_p0 = scmp.lt.s32.totalorder %s893_s19, %s1189_s6 }
  0x17   : > { %1004 = vmatpush3.bf16.msra.mxu0 %v1110_v0  ;;  %s952_s24 = sshll.u32 %s291_s21, 3  ;;  %1063 = vmatpush3.bf16.msra.mxu1 %v1112_v2  ;;  %v1116_v30 = vld [vmem:[%s1540_s3 + $0x18] sm:$0xff]   ;;  %v1117_v31 = vld [vmem:[%s1540_s3 + $0x10] sm:$0xff]   ;;  %v1118_v32 = vld [vmem:[%s1540_s3 + $0x8] sm:$0xff]   ;;  %vm805_vm5 = vcmask 392512   ;;  %vm812_vm6 = vcmask 458112  }
  0x18   : > { %1005 = vmatprep.subr.bf16.mxu0 %v1111_v1  ;;  %s1354_s30 = scalar_lea.vmem %s1537_s0, %s952_s24  ;;  %1056 = vmatprep.subr.bf16.mxu1 %v1113_v3  ;;  %v1119_v33 = vld [vmem:[%s1540_s3] sm:$0xff]   ;;  %vm819_vm7 = vcmask 523712   ;;  %vm826_vm8 = vcmask 589312   ;;  %vm833_vm9 = vcmask 654912   ;;  %vm840_vm10 = vcmask 720512   ;;  %s1184_s24 = scalar_lea.vmem %s893_s19, 16 }
  0x19   : > { %v300_v4 = vld [vmem:[%s1354_s30] sm:$0xff]  ;;  %v301_v5 = vld [vmem:[%s1354_s30 + $0x8] sm:$0xff]  ;;  %v302_v6 = vld [vmem:[%s1354_s30 + $0x10] sm:$0xff]  ;;  %vm847_vm11 = vcmask 786112   ;;  %vm854_vm12 = vcmask 851712   ;;  %vm861_vm13 = vcmask 917312   ;;  %p1185_p11 = scmp.ne.s32.totalorder %s893_s19, %s1184_s24 }
  0x1a   : > { %v316_v7 = vpack.c.bf16 %v301_v5, %v300_v4  ;;  %v303_v8 = vld [vmem:[%s1354_s30 + $0x18] sm:$0xff]  ;;  %v304_v9 = vld [vmem:[%s1354_s30 + $0x20] sm:$0xff]  ;;  %v305_v10 = vld [vmem:[%s1354_s30 + $0x28] sm:$0xff]  ;;  %vm868_vm14 = vcmask 982912   ;;  %vm875_vm15 = vcmask 1048512  }
  0x1b   : > { %1006 = vmatpush3.bf16.msra.mxu0 %v1111_v1  ;;  %v317_v11 = vpack.c.bf16 %v303_v8, %v302_v6  ;;  %v318_v12 = vpack.c.bf16 %v305_v10, %v304_v9  ;;  %1064 = vmatpush3.bf16.msra.mxu1 %v1113_v3  ;;  %v306_v13 = vld [vmem:[%s1354_s30 + $0x30] sm:$0xff]  ;;  %v307_v14 = vld [vmem:[%s1354_s30 + $0x38] sm:$0xff]  ;;  %v308_v15 = vld [vmem:[%s1354_s30 + $0x40] sm:$0xff]  ;;  %p1186_p12 = pnand %p1185_p11, %p1325_p5 }
  0x1c   : > { %1023 = vmatprep.subr.bf16.mxu0 %v1112_v2  ;;  %1007 = vmatprep.mubr.msk.bf16.mxu0 %vm347_vm0, %v316_v7  ;;  %v309_v16 = vld [vmem:[%s1354_s30 + $0x48] sm:$0xff]  ;;  %v319_v17 = vpack.c.bf16 %v307_v14, %v306_v13  ;;  %v310_v19 = vld [vmem:[%s1354_s30 + $0x50] sm:$0xff]  ;;  %v311_v20 = vld [vmem:[%s1354_s30 + $0x58] sm:$0xff] }
  0x1d   : > { %v320_v18 = vpack.c.bf16 %v309_v16, %v308_v15  ;;  %v312_v21 = vld [vmem:[%s1354_s30 + $0x60] sm:$0xff]  ;;  %v313_v22 = vld [vmem:[%s1354_s30 + $0x68] sm:$0xff]  ;;  %v321_v23 = vpack.c.bf16 %v311_v20, %v310_v19  ;;  %v314_v25 = vld [vmem:[%s1354_s30 + $0x70] sm:$0xff]  ;;  %1057 = vmatprep.subr.bf16.mxu1 %v1114_v28  ;;  %p1187_p13 = pneg %p1186_p12 }
  0x1e   : > { %1008 = vmatmul.mubr.msk.bf16.vlgmr.msra.gmra.mxu0 %vm347_vm0, %v317_v11  ;;  %v322_v24 = vpack.c.bf16 %v313_v22, %v312_v21  ;;  %v315_v26 = vld [vmem:[%s1354_s30 + $0x78] sm:$0xff]  ;;  %v953_v35 = vld [vmem:[%s1539_s2] ss:$0 sm:$0xff]  ;;  %s1190_s30 = scalar_lea.vmem %s1189_s6, 32 }
  0x1f   : > { %1011 = vmatprep.mubr.msk.bf16.mxu0 %vm347_vm0, %v318_v12  ;;  %1024 = vmatpush3.bf16.msra.mxu0 %v1112_v2  ;;  %v323_v27 = vpack.c.bf16 %v315_v26, %v314_v25  ;;  %p1192_p1 = scmp.lt.s32.totalorder %s1190_s30, %s1184_s24 }
  0x20   : > { %1025 = vmatprep.subr.bf16.mxu0 %v1113_v3  ;;  %1065 = vmatpush3.bf16.msra.mxu1 %v1114_v28 }
  0x21   : > { %1058 = vmatprep.subr.bf16.mxu1 %v1115_v29  ;;  %p1193_p2 = por %p1192_p1, %p1191_p0 }
  0x23   : > { %1026 = vmatpush3.bf16.msra.mxu0 %v1113_v3  ;;  %p1194_p3 = pnand %p1193_p2, %p1187_p13 }
  0x24   : > { %1027 = vmatprep.subr.bf16.mxu0 %v1114_v28  ;;  %1066 = vmatpush3.bf16.msra.mxu1 %v1115_v29 }
  0x25   : > { %1059 = vmatprep.subr.bf16.mxu1 %v1116_v30 }
  0x26   : > { %1012 = vmatmul.mubr.msk.bf16.gmra.mxu0 %vm347_vm0, %v319_v17 }
  0x27   : > { %1015 = vmatprep.mubr.msk.bf16.mxu0 %vm347_vm0, %v320_v18  ;;  %1028 = vmatpush3.bf16.msra.mxu0 %v1114_v28 }
  0x28   : > { %1029 = vmatprep.subr.bf16.mxu0 %v1115_v29  ;;  %1067 = vmatpush3.bf16.msra.mxu1 %v1116_v30 }
  0x29   : > { %1060 = vmatprep.subr.bf16.mxu1 %v1117_v31 }
  0x2b   : > { %1030 = vmatpush3.bf16.msra.mxu0 %v1115_v29 }
  0x2c   : > { %1031 = vmatprep.subr.bf16.mxu0 %v1116_v30  ;;  %1068 = vmatpush3.bf16.msra.mxu1 %v1117_v31 }
  0x2d   : > { %1061 = vmatprep.subr.bf16.mxu1 %v1118_v32 }
  0x2e   : > { %1016 = vmatmul.mubr.msk.bf16.gmra.mxu0 %vm347_vm0, %v321_v23 }
  0x2f   : > { %1019 = vmatprep.mubr.msk.bf16.mxu0 %vm347_vm0, %v322_v24  ;;  %1032 = vmatpush3.bf16.msra.mxu0 %v1116_v30 }
  0x30   : > { %1033 = vmatprep.subr.bf16.mxu0 %v1117_v31  ;;  %1069 = vmatpush3.bf16.msra.mxu1 %v1118_v32 }
  0x31   : > { %1062 = vmatprep.subr.bf16.mxu1 %v1119_v33 }
  0x33   : > { %1034 = vmatpush3.bf16.msra.mxu0 %v1117_v31 }
  0x34   : > { %1035 = vmatprep.subr.bf16.mxu0 %v1118_v32  ;;  %1070 = vmatpush3.bf16.msra.mxu1 %v1119_v33 }
  0x36   : > { %1020 = vmatmul.mubr.msk.bf16.gmra.mxu0 %vm347_vm0, %v323_v27  ;;  %v1404_v27 = vld [vmem:[%s1541_s4] ss:$0 sm:$0xff] }
  0x37   : > { %1036 = vmatpush3.bf16.msra.mxu0 %v1118_v32 }
  0x38   : > { %1037 = vmatprep.subr.bf16.mxu0 %v1119_v33 }
  0x3b   : > { %1038 = vmatpush3.bf16.msra.mxu0 %v1119_v33 }
  0xde   : > { %v1009_v34 = vpop.f32.mrf.mxu0 }
  0xdf   : > { %v415_v40 = vadd.f32 %v1009_v34, %v953_v35 }
  0xe0   : > { %v406_v36 = vpop.f32.mrf.mxu0 }
  0xe1   : > { %v407_v37 = vadd.f32 %v953_v35, %v406_v36 }
  0xe2   : > { %v1010_v38 = vpop.f32.mrf.mxu0 }
  0xe3   : > { %v418_v39 = vadd.f32 %v1010_v38, %v953_v35  ;;  %1120 = vtanh.f32 %v407_v37 }
  0xe4   : > { %v409_v41 = vpop.f32.mrf.mxu0 }
  0xe5   : > { %v410_v42 = vadd.f32 %v953_v35, %v409_v41  ;;  %1122 = vtanh.f32 %v418_v39 }
  0xe6   : > { %v1013_v43 = vpop.f32.mrf.mxu0 }
  0xe7   : > { %1124 = vtanh.f32 %v410_v42  ;;  %v431_v48 = vadd.f32 %v1013_v43, %v953_v35  ;;  %v1416_v43 = vld [vmem:[%s1542_s5] ss:$0 sm:$0xff] }
  0xe8   : > { %1126 = vtanh.f32 %v415_v40  ;;  %v422_v44 = vpop.f32.mrf.mxu0 }
  0xe9   : > { %v423_v45 = vadd.f32 %v953_v35, %v422_v44 }
  0xea   : > { %v1014_v46 = vpop.f32.mrf.mxu0 }
  0xeb   : > { %v434_v47 = vadd.f32 %v1014_v46, %v953_v35  ;;  %1128 = vtanh.f32 %v423_v45 }
  0xec   : > { %v425_v49 = vpop.f32.mrf.mxu0 }
  0xed   : > { %v426_v50 = vadd.f32 %v953_v35, %v425_v49  ;;  %1130 = vtanh.f32 %v434_v47 }
  0xee   : > { %v1017_v51 = vpop.f32.mrf.mxu0 }
  0xef   : > { %1132 = vtanh.f32 %v426_v50  ;;  %v447_v59 = vadd.f32 %v1017_v51, %v953_v35 }
  0xf0   : > { %1134 = vtanh.f32 %v431_v48  ;;  %v438_v52 = vpop.f32.mrf.mxu0  ;;  %v1121_v54 = vpop.eup %1120 }
  0xf1   : > { %v439_v53 = vadd.f32 %v953_v35, %v438_v52 }
  0xf2   : > { %v1018_v55 = vpop.f32.mrf.mxu0  ;;  %v1123_v56 = vpop.eup %1122 }
  0xf3   : > { %v450_v57 = vadd.f32 %v1018_v55, %v953_v35  ;;  %1136 = vtanh.f32 %v439_v53 }
  0xf4   : > { %v1125_v58 = vpop.eup %1124  ;;  %v441_v60 = vpop.f32.mrf.mxu0 }
  0xf5   : > { %v1127_v61 = vpop.eup %1126  ;;  %v442_v62 = vadd.f32 %v953_v35, %v441_v60  ;;  %v485_v63 = vpack.c.bf16 %v1125_v58, %v1121_v54  ;;  %1138 = vtanh.f32 %v450_v57 }
  0xf6   : > { %v1021_v0 = vpop.f32.mrf.mxu0  ;;  %v486_v1 = vpack.c.bf16 %v1123_v56, %v1127_v61 }
  0xf7   : > { %1140 = vtanh.f32 %v442_v62  ;;  %1039 = vmatprep.mubr.bf16.mxu0 %v485_v63  ;;  %v463_v9 = vadd.f32 %v1021_v0, %v953_v35 }
  0xf8   : > { %1142 = vtanh.f32 %v447_v59  ;;  %v454_v2 = vpop.f32.mrf.mxu0  ;;  %1040 = vmatmul.mubr.bf16.vlgmr.msra.gmra.mxu0 %v486_v1  ;;  %v1129_v4 = vpop.eup %1128 }
  0xf9   : > { %v455_v3 = vadd.f32 %v953_v35, %v454_v2 }
  0xfa   : > { %v1022_v5 = vpop.f32.mrf.mxu0  ;;  %v1131_v6 = vpop.eup %1130 }
  0xfb   : > { %v466_v7 = vadd.f32 %v1022_v5, %v953_v35  ;;  %1144 = vtanh.f32 %v455_v3 }
  0xfc   : > { %v1133_v8 = vpop.eup %1132  ;;  %v457_v10 = vpop.f32.mrf.mxu0 }
  0xfd   : > { %v1135_v11 = vpop.eup %1134  ;;  %v458_v12 = vadd.f32 %v953_v35, %v457_v10  ;;  %v487_v13 = vpack.c.bf16 %v1133_v8, %v1129_v4  ;;  %1146 = vtanh.f32 %v466_v7 }
  0xfe   : > { %v488_v14 = vpack.c.bf16 %v1131_v6, %v1135_v11 }
  0xff   : > { %1148 = vtanh.f32 %v458_v12  ;;  %1043 = vmatprep.mubr.bf16.mxu1 %v487_v13 }
 0x100   : > { %1150 = vtanh.f32 %v463_v9  ;;  %1044 = vmatmul.mubr.bf16.vlgmr.msra.gmra.mxu1 %v488_v14  ;;  %v1137_v15 = vpop.eup %1136 }
 0x102   : > { %v1139_v16 = vpop.eup %1138 }
 0x104   : > { %v1141_v17 = vpop.eup %1140 }
 0x105   : > { %v1143_v18 = vpop.eup %1142  ;;  %v489_v19 = vpack.c.bf16 %v1141_v17, %v1137_v15 }
 0x106   : > { %v490_v20 = vpack.c.bf16 %v1139_v16, %v1143_v18 }
 0x107   : > { %1047 = vmatprep.mubr.bf16.mxu1 %v489_v19 }
 0x108   : > { %1048 = vmatmul.mubr.bf16.gmra.mxu1 %v490_v20  ;;  %v1145_v21 = vpop.eup %1144 }
 0x10a   : > { %v1147_v22 = vpop.eup %1146 }
 0x10c   : > { %v1149_v23 = vpop.eup %1148 }
 0x10d   : > { %v1151_v24 = vpop.eup %1150  ;;  %v491_v25 = vpack.c.bf16 %v1149_v23, %v1145_v21 }
 0x10e   : > { %v492_v26 = vpack.c.bf16 %v1147_v22, %v1151_v24 }
 0x10f   : > { %1051 = vmatprep.mubr.bf16.mxu1 %v491_v25 }
 0x110   : > { %1052 = vmatmul.mubr.bf16.gmra.mxu1 %v492_v26 }
 0x1b8   : > { %v1041_v28 = vpop.f32.mrf.mxu0 }
 0x1b9   : > { %v607_v29 = vadd.f32 %v1041_v28, %v1404_v27 }
 0x1ba   : > { %v598_v30 = vpop.f32.mrf.mxu0 }
 0x1bb   : > { %1152 = vtanh.f32 %v607_v29  ;;  %v599_v31 = vadd.f32 %v1404_v27, %v598_v30  ;;  %v766_v29 = vlaneseq }
 0x1bc   : > { %v1042_v32 = vpop.f32.mrf.mxu0 }
 0x1bd   : > { %1154 = vtanh.f32 %v599_v31  ;;  %v610_v33 = vadd.f32 %v1042_v32, %v1404_v27  ;;  %v1443_v30 = vand.u32 127, %v766_v29 }
 0x1be   : > { %v601_v34 = vpop.f32.mrf.mxu0 }
 0x1bf   : > { %1156 = vtanh.f32 %v610_v33  ;;  %v602_v35 = vadd.f32 %v1404_v27, %v601_v34  ;;  %v772_v31 = vadd.s32 4294967288, %v1443_v30  ;;  %v1446_v34 = vshrl.u32 %v766_v29, 7 }
 0x1c0   : > { %v1045_v36 = vpop.f32.mrf.mxu1 }
 0x1c1   : > { %1158 = vtanh.f32 %v602_v35  ;;  %v623_v37 = vadd.f32 %v1045_v36, %v1404_v27  ;;  %v779_v35 = vadd.s32 4294967280, %v1443_v30  ;;  %v1449_v36 = vstv %s732_s15 }
 0x1c2   : > { %v614_v38 = vpop.f32.mrf.mxu1 }
 0x1c3   : > { %1160 = vtanh.f32 %v623_v37  ;;  %v615_v39 = vadd.f32 %v1404_v27, %v614_v38  ;;  %v775_v37 = vsub.s32 %v772_v31, %v1446_v34  ;;  %v770_v38 = vsub.s32 %v1443_v30, %v1446_v34 }
 0x1c4   : > { %v1046_v40 = vpop.f32.mrf.mxu1 }
 0x1c5   : > { %v626_v41 = vadd.f32 %v1046_v40, %v1404_v27  ;;  %1162 = vtanh.f32 %v615_v39 }
 0x1c6   : > { %v617_v42 = vpop.f32.mrf.mxu1 }
 0x1c7   : > { %1164 = vtanh.f32 %v626_v41  ;;  %v618_v44 = vadd.f32 %v1404_v27, %v617_v42  ;;  %v786_v41 = vadd.s32 4294967272, %v1443_v30 }
 0x1c8   : > { %v1153_v45 = vpop.eup %1152  ;;  %v1049_v46 = vpop.f32.mrf.mxu1 }
 0x1c9   : > { %1166 = vtanh.f32 %v618_v44  ;;  %v639_v47 = vadd.f32 %v1049_v46, %v1404_v27  ;;  %v686_v48 = vmul.f32 %v1153_v45, %v1416_v43 }
 0x1ca   : > { %v1155_v49 = vpop.eup %1154  ;;  %v630_v50 = vpop.f32.mrf.mxu1 }
 0x1cb   : > { %1168 = vtanh.f32 %v639_v47  ;;  %v631_v51 = vadd.f32 %v1404_v27, %v630_v50  ;;  %704 = vadd.xlane.f32.xlu1 %v686_v48  ;;  %v684_v52 = vmul.f32 %v1155_v49, %v1416_v43  ;;  %v793_v47 = vadd.s32 4294967264, %v1443_v30 }
 0x1cc   : > { %v1157_v53 = vpop.eup %1156  ;;  %v1050_v54 = vpop.f32.mrf.mxu1  ;;  %v789_v50 = vsub.s32 %v786_v41, %v1446_v34 }
 0x1cd   : > { %v642_v55 = vadd.f32 %v1050_v54, %v1404_v27  ;;  %700 = vadd.xlane.f32.xlu0 %v684_v52  ;;  %v687_v56 = vmul.f32 %v1157_v53, %v1416_v43  ;;  %1170 = vtanh.f32 %v631_v51  ;;  %v800_v51 = vadd.s32 4294967256, %v1443_v30 }
 0x1ce   : > { %v1159_v57 = vpop.eup %1158  ;;  %v633_v58 = vpop.f32.mrf.mxu1  ;;  %v807_v54 = vadd.s32 4294967248, %v1443_v30 }
 0x1cf   : > { %1172 = vtanh.f32 %v642_v55  ;;  %v634_v59 = vadd.f32 %v1404_v27, %v633_v58  ;;  %706 = vadd.xlane.f32.xlu1 %v687_v56  ;;  %v685_v60 = vmul.f32 %v1159_v57, %v1416_v43  ;;  %v796_v57 = vsub.s32 %v793_v47, %v1446_v34 }
 0x1d0   : > { %v1161_v61 = vpop.eup %1160  ;;  %v1053_v62 = vpop.f32.mrf.mxu1  ;;  %v870_v47 = vadd.s32 4294967176, %v1443_v30 }
 0x1d1   : > { %1174 = vtanh.f32 %v634_v59  ;;  %702 = vadd.xlane.f32.xlu0 %v685_v60  ;;  %v655_v1 = vadd.f32 %v1053_v62, %v1404_v27  ;;  %v690_v3 = vmul.f32 %v1161_v61, %v1416_v43  ;;  %v803_v61 = vsub.s32 %v800_v51, %v1446_v34 }
 0x1d2   : > { %v646_v63 = vpop.f32.mrf.mxu1  ;;  %v1163_v0 = vpop.eup %1162 }
 0x1d3   : > { %v647_v2 = vadd.f32 %v1404_v27, %v646_v63  ;;  %v688_v11 = vmul.f32 %v1163_v0, %v1416_v43  ;;  %v810_v63 = vsub.s32 %v807_v54, %v1446_v34  ;;  %v814_v0 = vadd.s32 4294967240, %v1443_v30 }
 0x1d4   : > { %v1165_v4 = vpop.eup %1164  ;;  %v1054_v5 = vpop.f32.mrf.mxu1 }
 0x1d5   : > { %1176 = vtanh.f32 %v647_v2  ;;  %712 = vadd.xlane.f32.xlu0 %v690_v3  ;;  %v691_v6 = vmul.f32 %v1165_v4, %v1416_v43  ;;  %v658_v9 = vadd.f32 %v1054_v5, %v1404_v27  ;;  %v821_v5 = vadd.s32 4294967232, %v1443_v30 }
 0x1d6   : > { %v1167_v7 = vpop.eup %1166  ;;  %v649_v8 = vpop.f32.mrf.mxu1  ;;  %1178 = vtanh.f32 %v655_v1 }
 0x1d7   : > { %v650_v10 = vadd.f32 %v1404_v27, %v649_v8  ;;  %714 = vadd.xlane.f32.xlu1 %v691_v6  ;;  %v689_v13 = vmul.f32 %v1167_v7, %v1416_v43  ;;  %v835_v7 = vadd.s32 4294967216, %v1443_v30 }
 0x1d8   : > { %v1169_v12 = vpop.eup %1168 }
 0x1d9   : > { %1180 = vtanh.f32 %v650_v10  ;;  %708 = vadd.xlane.f32.xlu0 %v688_v11  ;;  %v694_v15 = vmul.f32 %v1169_v12, %v1416_v43  ;;  %v828_v11 = vadd.s32 4294967224, %v1443_v30  ;;  %v817_v12 = vsub.s32 %v814_v0, %v1446_v34 }
 0x1da   : > { %v1171_v14 = vpop.eup %1170  ;;  %1182 = vtanh.f32 %v658_v9 }
 0x1db   : > { %710 = vadd.xlane.f32.xlu1 %v689_v13  ;;  %v692_v19 = vmul.f32 %v1171_v14, %v1416_v43  ;;  %v842_v14 = vadd.s32 4294967208, %v1443_v30 }
 0x1dc   : > { %v1173_v16 = vpop.eup %1172 }
 0x1dd   : > { %720 = vadd.xlane.f32.xlu0 %v694_v15  ;;  %v695_v17 = vmul.f32 %v1173_v16, %v1416_v43 }
 0x1de   : > { %v1175_v18 = vpop.eup %1174 }
 0x1df   : > { %722 = vadd.xlane.f32.xlu1 %v695_v17  ;;  %v693_v20 = vmul.f32 %v1175_v18, %v1416_v43  ;;  %v824_v18 = vsub.s32 %v821_v5, %v1446_v34 }
 0x1e1   : > { %716 = vadd.xlane.f32.xlu0 %v692_v19  ;;  %v838_v19 = vsub.s32 %v835_v7, %v1446_v34 }
 0x1e2   : > { %v1177_v21 = vpop.eup %1176 }
 0x1e3   : > { %718 = vadd.xlane.f32.xlu1 %v693_v20  ;;  %v696_v22 = vmul.f32 %v1177_v21, %v1416_v43  ;;  %v1179_v23 = vpop.eup %1178  ;;  %v849_v21 = vadd.s32 4294967200, %v1443_v30 }
 0x1e4   : > { %v698_v26 = vmul.f32 %v1179_v23, %v1416_v43 }
 0x1e5   : > { %724 = vadd.xlane.f32.xlu0 %v696_v22 }
 0x1e6   : > { %v1181_v24 = vpop.eup %1180 }
 0x1e7   : > { %v697_v25 = vmul.f32 %v1181_v24, %v1416_v43  ;;  %v1183_v27 = vpop.eup %1182  ;;  %v831_v24 = vsub.s32 %v828_v11, %v1446_v34 }
 0x1e8   : > { %v699_v28 = vmul.f32 %v1183_v27, %v1416_v43  ;;  %v782_v43 = vsub.s32 %v779_v35, %v1446_v34  ;;  %v845_v27 = vsub.s32 %v842_v14, %v1446_v34 }
 0x1e9   : > { %726 = vadd.xlane.f32.xlu1 %v697_v25  ;;  %728 = vadd.xlane.f32.xlu0 %v698_v26 }
 0x1ed   : > { %730 = vadd.xlane.f32.xlu1 %v699_v28 }
 0x254   : > { %v705_v32 = vpop.xlane.xlu1 %704 }
 0x255   : > { %v736_v45 = vadd.f32 %v1449_v36, %v705_v32 }
 0x256   : > { %v701_v33 = vpop.xlane.xlu0 %700 }
 0x257   : > { %v734_v39 = vadd.f32 %v1449_v36, %v701_v33  ;;  %v783_v56 = vrot.slane %v736_v45, %v782_v43  ;;  %v856_v33 = vadd.s32 4294967192, %v1443_v30 }
 0x258   : > { %v707_v44 = vpop.xlane.xlu1 %706 }
 0x259   : > { %v771_v48 = vrot.slane %v734_v39, %v770_v38  ;;  %v737_v52 = vadd.f32 %v1449_v36, %v707_v44  ;;  %v863_v39 = vadd.s32 4294967184, %v1443_v30 }
 0x25a   : > { %v703_v40 = vpop.xlane.xlu0 %702 }
 0x25b   : > { %v735_v42 = vadd.f32 %v1449_v36, %v703_v40  ;;  %v790_v62 = vrot.slane %v737_v52, %v789_v50  ;;  %v866_v51 = vsub.s32 %v863_v39, %v1446_v34 }
 0x25d   : > { %v776_v46 = vrot.slane %v735_v42, %v775_v37  ;;  %v852_v37 = vsub.s32 %v849_v21, %v1446_v34 }
 0x25e   : > { %v713_v49 = vpop.xlane.xlu0 %712 }
 0x25f   : > { %v778_v53 = vsel %vm777_vm1, %v776_v46, %v771_v48  ;;  %v740_v2 = vadd.f32 %v1449_v36, %v713_v49  ;;  %v859_v46 = vsub.s32 %v856_v33, %v1446_v34 }
 0x260   : > { %v715_v55 = vpop.xlane.xlu1 %714  ;;  %v785_v59 = vsel %vm784_vm2, %v783_v56, %v778_v53 }
 0x261   : > { %v792_v6 = vsel %vm791_vm3, %v790_v62, %v785_v59  ;;  %v741_v13 = vadd.f32 %v1449_v36, %v715_v55  ;;  %v811_v16 = vrot.slane %v740_v2, %v810_v63 }
 0x262   : > { %v709_v58 = vpop.xlane.xlu0 %708 }
 0x263   : > { %v738_v60 = vadd.f32 %v1449_v36, %v709_v58  ;;  %v818_v25 = vrot.slane %v741_v13, %v817_v12 }
 0x264   : > { %v711_v1 = vpop.xlane.xlu1 %710 }
 0x265   : > { %v797_v3 = vrot.slane %v738_v60, %v796_v57  ;;  %v739_v4 = vadd.f32 %v1449_v36, %v711_v1  ;;  %v873_v57 = vsub.s32 %v870_v47, %v1446_v34 }
 0x266   : > { %v721_v8 = vpop.xlane.xlu0 %720 }
 0x267   : > { %v799_v9 = vsel %vm798_vm4, %v797_v3, %v792_v6  ;;  %v804_v10 = vrot.slane %v739_v4, %v803_v61  ;;  %v744_v26 = vadd.f32 %v1449_v36, %v721_v8 }
 0x268   : > { %v723_v15 = vpop.xlane.xlu1 %722 }
 0x269   : > { %v806_v17 = vsel %vm805_vm5, %v804_v10, %v799_v9  ;;  %v745_v29 = vadd.f32 %v1449_v36, %v723_v15  ;;  %v839_v43 = vrot.slane %v744_v26, %v838_v19 }
 0x26a   : > { %v717_v20 = vpop.xlane.xlu0 %716  ;;  %v813_v22 = vsel %vm812_vm6, %v811_v16, %v806_v17 }
 0x26b   : > { %v742_v23 = vadd.f32 %v1449_v36, %v717_v20  ;;  %v820_v35 = vsel %vm819_vm7, %v818_v25, %v813_v22  ;;  %v846_v44 = vrot.slane %v745_v29, %v845_v27 }
 0x26c   : > { %v719_v28 = vpop.xlane.xlu1 %718 }
 0x26d   : > { %v825_v31 = vrot.slane %v742_v23, %v824_v18  ;;  %v743_v32 = vadd.f32 %v1449_v36, %v719_v28 }
 0x26e   : > { %v725_v38 = vpop.xlane.xlu0 %724 }
 0x26f   : > { %v827_v40 = vsel %vm826_vm8, %v825_v31, %v820_v35  ;;  %v832_v41 = vrot.slane %v743_v32, %v831_v24  ;;  %v746_v42 = vadd.f32 %v1449_v36, %v725_v38 }
 0x271   : > { %v834_v45 = vsel %vm833_vm9, %v832_v41, %v827_v40  ;;  %v853_v49 = vrot.slane %v746_v42, %v852_v37 }
 0x272   : > { %v841_v48 = vsel %vm840_vm10, %v839_v43, %v834_v45  ;;  %v727_v50 = vpop.xlane.xlu1 %726  ;;  %v729_v52 = vpop.xlane.xlu0 %728 }
 0x273   : > { %v848_v53 = vsel %vm847_vm11, %v846_v44, %v841_v48  ;;  %v747_v54 = vadd.f32 %v1449_v36, %v727_v50  ;;  %v748_v55 = vadd.f32 %v1449_v36, %v729_v52 }
 0x274   : > { %v855_v58 = vsel %vm854_vm12, %v853_v49, %v848_v53 }
 0x275   : > { %v860_v56 = vrot.slane %v747_v54, %v859_v46  ;;  %v867_v30 = vrot.slane %v748_v55, %v866_v51 }
 0x276   : > { %v731_v59 = vpop.xlane.xlu1 %730 }
 0x277   : > { %v862_v60 = vsel %vm861_vm13, %v860_v56, %v855_v58  ;;  %v749_v61 = vadd.f32 %v1449_v36, %v731_v59 }
 0x278   : > { %v869_v63 = vsel %vm868_vm14, %v867_v30, %v862_v60 }
 0x279   : > { %v874_v62 = vrot.slane %v749_v61, %v873_v57 }
 0x27b   : > { %v876_v34 = vsel %vm875_vm15, %v874_v62, %v869_v63 }
 0x27c   : > { %878 = vst [vmem:[%s284_s18] sm:$0x1] %v876_v34 }
 0x27d   : > { %1197 = shalt.err (!%p1194_p3)
}
 0x27e   : > { %s1198_s16 = scalar_lea.hbm %s1502_s22, 16  ;;  %s1202_s14 = scalar_lea.hbm %s1544_s7, 32 }
 0x27f   : > { %p1199_p4 = scmp.ne.s32.totalorder %s1502_s22, %s1198_s16  ;;  %p1203_p9 = scmp.lt.s32.totalorder %s1502_s22, %s1544_s7 }
 0x280   : > { %p1204_p10 = scmp.lt.s32.totalorder %s1202_s14, %s1198_s16 }
 0x281   : > { %p1200_p7 = pnand %p1199_p4, %p1325_p5 }
 0x282   : > { %p1205_p11 = por %p1204_p10, %p1203_p9 }
 0x283   : > { %p1201_p8 = pneg %p1200_p7 }
 0x285   : > { %p1206_p12 = pnand %p1205_p11, %p1201_p8 }
 0x287   : > { %1209 = shalt.err (!%p1206_p12)
}
 0x288   : > { %1071 = dma.vmem_to_hbm [thread:$0]  (%p1325_p5), %s893_s19, 16, %s1502_s22, %s880_s23  }
 0x289 PF: > { %p1077_p13 = scmp.ge.s32.totalorder %s1244_s29, 2  ;;  %s904_s18 = sand.u32 1, %s1232_s26  }
 0x28a   : > { %s905_s20 = scalar_lea.sflag [#allocation4], %s904_s18 }
 0x28b   : > { %p1074_p0 = pnand %p1077_p13, %p1329_p6 }
 0x28d   : > { %p1075_p1 = pneg %p1074_p0 }
 0x28f   : > { %1227 = dma.done.wait (%p1075_p1), %s905_s20, 16  }
 0x290   : > { %1229 = vsyncadd (%p1075_p1), %s905_s20, 4294967280  ;;  %p18_p2 = scmp.ge.s32.totalorder %s1313_s8, 4   ;;  %s1547_s26 = smov %s1236_s27 }
 0x291   : > { %s1548_s27 = smov %s1240_s28  ;;  %s1549_s28 = smov %s1323_s11 }
 0x292   : > { %s1550_s29 = smov %s1313_s8  ;;  %20 = sbr.rel (!%p18_p2) target bundleno = 5 (0x5), region = 83 }
 0x297   :  { %909 = vsyncpa [#allocation4], 1 }
 0x298   :  { %911 = vsyncpa [#allocation4 + $0x1], 1 }

</bundles_post_ra>
